<compile_context>
chip_gen: v5e
topology: v5e:2x2
jax: 0.10.0
libtpu: 0.0.40
codegen_flags: <defaults>
</compile_context>

<pallas_src>
import jax
import jax.numpy as jnp
from jax import lax
from jax.experimental import pallas as pl
from jax.experimental.pallas import tpu as pltpu

HIDDEN = 32          # backbone embedding size (small synthetic choice)
EMB_DIM = 512        # Head.emb output features
OUT_FEATURES = 5     # ArcMarginProduct_subcenter out_features
K_SUB = 3            # subcenters per class
LANE = 128           # TPU lane width
W_BIG_COLS = EMB_DIM + K_SUB * LANE   # 512 + 3*128 = 896  (7 x 128 lanes)
EPS = 1e-12          # F.normalize eps

# Scoped-VMEM cap: above v5e's 16 MiB default (needed once batch_tile >= ~2048)
# and comfortably under v7x's 64 MiB physical VMEM per TensorCore.
VMEM_LIMIT_BYTES = 48 * 1024 * 1024


def head_kernel(x_ref, w_big_ref, cos_ref, emb_ref):
    # x_ref:     (TB, HIDDEN)
    # w_big_ref: (HIDDEN, 512 + 3*128) f32
    #            cols [0:512)        = W_emb^T
    #            cols [512+128*s ...) = W_emb^T @ normalize(W_arc)^T for
    #                                   subcenter s, zero-padded 5 -> 128 lanes.
    xv = x_ref[...].astype(jnp.float32)

    # Single wide MXU matmul (f32 accumulate).  All slices below are
    # 128-lane-aligned, so no XLU relayout / strided lane gathers.
    y = jnp.dot(xv, w_big_ref[...], preferred_element_type=jnp.float32)   # (TB, 896)

    emb = y[:, :EMB_DIM]                                                  # (TB, 512)

    # Row-wise L2 normalize via EUP rsqrt: emb / max(||emb||, eps)
    # == emb * rsqrt(max(sum(emb^2), eps^2)).
    # NOTE: keep the max(ss, EPS*EPS) clamp — rows of a padded partial batch
    # tile have ss == 0 and the clamp keeps inv finite (emb * inv == 0 there,
    # benign and masked on the store).  Do not replace with a bare rsqrt.
    ss = jnp.sum(emb * emb, axis=-1, keepdims=True)                       # (TB, 1)
    inv = lax.rsqrt(jnp.maximum(ss, EPS * EPS))                           # (TB, 1)
    emb_ref[...] = (emb * inv).astype(emb_ref.dtype)

    # Subcenter max over three 128-lane blocks (two VPU maximums), then scale
    # by inv once (inv > 0, so scaling commutes with the max).
    c0 = y[:, EMB_DIM:EMB_DIM + LANE]
    c1 = y[:, EMB_DIM + LANE:EMB_DIM + 2 * LANE]
    c2 = y[:, EMB_DIM + 2 * LANE:EMB_DIM + 3 * LANE]
    c = jnp.maximum(jnp.maximum(c0, c1), c2)                              # (TB, 128)
    cos_ref[...] = (c[:, :OUT_FEATURES] * inv).astype(cos_ref.dtype)


def prepare_head_params(w_emb, w_arc):
    """One-time, input-independent parameter prep (hoisted out of the hot path).

    w_emb: (EMB_DIM, HIDDEN)             nn.Linear weight
    w_arc: (OUT_FEATURES*K_SUB, EMB_DIM) ArcMargin weight (rows: class*K + sub)

    Returns:
      w_big: (HIDDEN, 512 + K_SUB*128) f32 — [W_emb^T | fused subcenter blocks].
             The fused product (K=512 contraction) is accumulated and kept in
             f32; it is never cast to bf16 (review correctness concern).
    """
    w_emb_t = jnp.transpose(w_emb).astype(jnp.float32)                    # (H, 512)
    w_arc_n = w_arc / jnp.maximum(
        jnp.linalg.norm(w_arc, axis=-1, keepdims=True), EPS)              # (O*K, 512)
    w_arc_n = w_arc_n.reshape(OUT_FEATURES, K_SUB, EMB_DIM)               # class, sub, emb
    # w_fused[k, h, o] = sum_e W_emb_t[h, e] * W_arc_n[o, k, e]
    w_fused = jnp.einsum("he,oke->kho", w_emb_t, w_arc_n)                 # (K, H, O)
    # Zero-pad each (H, O) subcenter block to a full 128-lane block and concat
    # after W_emb^T so the kernel does one wide, lane-dense matmul.
    pads = [jnp.pad(w_fused[s], ((0, 0), (0, LANE - OUT_FEATURES)))
            for s in range(K_SUB)]
    w_big = jnp.concatenate([w_emb_t] + pads, axis=1)                     # (H, 896)
    return w_big


def head_forward(x, w_big, *, emb_dtype=None, batch_tile=1024):
    """x: (B, HIDDEN) f32 or bf16.  Returns (cosine (B, 5) f32, emb_n (B, 512)).

    emb_dtype defaults to x.dtype: pass bf16 x (and/or emb_dtype=bf16) on
    v6e/v7x to roughly halve the dominant HBM stream.
    """
    B = x.shape[0]
    emb_dtype = x.dtype if emb_dtype is None else jnp.dtype(emb_dtype)

    # Batch tile: large enough to amortize the ~0.35 us per-grid-step overhead
    # against the HBM-bound (tb, 512) emb writeback; multiple of 8 sublanes
    # when tiling; tiny batches use a single full-array block.
    tb = min(B, batch_tile)
    if tb < B:
        tb = max(8, (tb // 8) * 8)
    grid = (pl.cdiv(B, tb),)
    # TODO(synk): on v7x, for large B pick batch_tile so the parallel grid has
    # an even number (>=2) of steps to keep both TensorCores busy.

    cost = pl.CostEstimate(
        flops=2 * B * HIDDEN * W_BIG_COLS,
        transcendentals=B,                                   # one rsqrt per row
        bytes_accessed=(B * (HIDDEN * x.dtype.itemsize
                             + EMB_DIM * emb_dtype.itemsize
                             + OUT_FEATURES * 4)
                        + HIDDEN * W_BIG_COLS * 4),
    )

    out_shapes = (
        jax.ShapeDtypeStruct((B, OUT_FEATURES), jnp.float32),
        jax.ShapeDtypeStruct((B, EMB_DIM), emb_dtype),
    )
    return pl.pallas_call(
        head_kernel,
        out_shape=out_shapes,
        grid=grid,
        in_specs=[
            pl.BlockSpec((tb, HIDDEN), lambda i: (i, 0)),
            pl.BlockSpec((HIDDEN, W_BIG_COLS), lambda i: (0, 0)),
        ],
        out_specs=(
            pl.BlockSpec((tb, OUT_FEATURES), lambda i: (i, 0)),
            pl.BlockSpec((tb, EMB_DIM), lambda i: (i, 0)),
        ),
        compiler_params=pltpu.CompilerParams(
            dimension_semantics=("parallel",),
            vmem_limit_bytes=VMEM_LIMIT_BYTES),
        cost_estimate=cost,
    )(x, w_big)


def init_params(key):
    k1, k2 = jax.random.split(key)
    # nn.Linear default init ~ U(-1/sqrt(fan_in), 1/sqrt(fan_in))
    lim_emb = 1.0 / (HIDDEN ** 0.5)
    w_emb = jax.random.uniform(k1, (EMB_DIM, HIDDEN), jnp.float32,
                               minval=-lim_emb, maxval=lim_emb)
    # ArcMarginProduct_subcenter.reset_parameters: U(-1/sqrt(in), 1/sqrt(in)), in=512
    lim_arc = 1.0 / (EMB_DIM ** 0.5)
    w_arc = jax.random.uniform(k2, (OUT_FEATURES * K_SUB, EMB_DIM), jnp.float32,
                               minval=-lim_arc, maxval=lim_arc)
    return w_emb, w_arc


if __name__ == "__main__":
    key = jax.random.PRNGKey(0)
    k_x, k_p = jax.random.split(key)

    B = 2
    # Backbone features (stand-in for vit_backbone.encode_image(images)).
    x = jax.random.normal(k_x, (B, HIDDEN), jnp.float32)
    w_emb, w_arc = init_params(k_p)

    # Static prep once (outside the hot path).
    w_big = prepare_head_params(w_emb, w_arc)

    # Plain-JAX reference (original, unfused math).
    emb_ref = x @ w_emb.T
    emb_n_ref = emb_ref / jnp.maximum(
        jnp.linalg.norm(emb_ref, axis=-1, keepdims=True), EPS)
    w_n_ref = w_arc / jnp.maximum(
        jnp.linalg.norm(w_arc, axis=-1, keepdims=True), EPS)
    cos_all_ref = emb_n_ref @ w_n_ref.T
    cos_ref_v = jnp.max(cos_all_ref.reshape(B, OUT_FEATURES, K_SUB), axis=2)

    # f32 I/O path (tight check).
    cosine, emb_norm = head_forward(x, w_big)
    jax.block_until_ready((cosine, emb_norm))
    assert jnp.allclose(cosine, cos_ref_v, atol=1e-5), "cosine mismatch (f32)"
    assert jnp.allclose(emb_norm, emb_n_ref, atol=1e-5), "embedding mismatch (f32)"

    # bf16 I/O path (production config for v6e/v7x: halves the dominant
    # HBM-bound emb_n stream; fused weights + normalize math stay f32).
    cos_bf, emb_bf = head_forward(x.astype(jnp.bfloat16), w_big,
                                  emb_dtype=jnp.bfloat16)
    jax.block_until_ready((cos_bf, emb_bf))
    assert jnp.allclose(cos_bf.astype(jnp.float32), cos_ref_v, atol=3e-2), \
        "cosine mismatch (bf16)"
    assert jnp.allclose(emb_bf.astype(jnp.float32), emb_n_ref, atol=3e-2), \
        "embedding mismatch (bf16)"

    print("KERNEL_OK")
</pallas_src>

<mosaic_0001>
module attributes {stable_mosaic.version = 11 : i64} {
  func.func @head_kernel(%arg0: i32, %arg1: memref<2x32xf32, #tpu.memory_space<vmem>>, %arg2: memref<32x896xf32, #tpu.memory_space<vmem>>, %arg3: memref<2x5xf32, #tpu.memory_space<vmem>>, %arg4: memref<2x512xf32, #tpu.memory_space<vmem>>) attributes {dimension_semantics = [#tpu.dimension_semantics<parallel>], iteration_bounds = array<i64: 1>, scalar_prefetch = 0 : i64, scratch_operands = 0 : i64, tpu.core_type = #tpu.core_type<tc>, window_params = [{transform_indices = @transform_0, window_bounds = array<i64: 2, 32>}, {pipeline_mode = #tpu.pipeline_mode<synchronous>, transform_indices = @transform_1, window_bounds = array<i64: 32, 896>}, {transform_indices = @transform_2, window_bounds = array<i64: 2, 5>}, {transform_indices = @transform_3, window_bounds = array<i64: 2, 512>}]} {
    %c0 = arith.constant 0 : index
    %c0_0 = arith.constant 0 : index
    %0 = vector.load %arg1[%c0, %c0_0] : memref<2x32xf32, #tpu.memory_space<vmem>>, vector<2x32xf32>
    %c0_1 = arith.constant 0 : index
    %c0_2 = arith.constant 0 : index
    %1 = vector.load %arg2[%c0_1, %c0_2] : memref<32x896xf32, #tpu.memory_space<vmem>>, vector<32x896xf32>
    %cst = arith.constant dense<0.000000e+00> : vector<2x896xf32>
    %2 = tpu.matmul %0, %1, %cst {dimension_numbers = #tpu.dot_dimension_numbers<[1], [0], [0], [1], [0, 0, 1, 1], [], []>} : vector<2x32xf32>, vector<32x896xf32>, vector<2x896xf32> -> vector<2x896xf32>
    %3 = vector.extract_strided_slice %2 {offsets = [0, 0], sizes = [2, 512], strides = [1, 1]} : vector<2x896xf32> to vector<2x512xf32>
    %4 = arith.mulf %3, %3 : vector<2x512xf32>
    %cst_3 = arith.constant dense<0.000000e+00> : vector<2xf32>
    %5 = vector.multi_reduction <add>, %4, %cst_3 [1] : vector<2x512xf32> to vector<2xf32>
    %6 = vector.shape_cast %5 : vector<2xf32> to vector<2x1xf32>
    %cst_4 = arith.constant 1.000000e-24 : f32
    %7 = vector.broadcast %cst_4 : f32 to vector<2x1xf32>
    %8 = arith.maximumf %6, %7 : vector<2x1xf32>
    %9 = math.rsqrt %8 : vector<2x1xf32>
    %10 = vector.broadcast %9 : vector<2x1xf32> to vector<2x512xf32>
    %11 = arith.mulf %3, %10 : vector<2x512xf32>
    %c0_5 = arith.constant 0 : index
    %c0_6 = arith.constant 0 : index
    %12 = vector.load %arg4[%c0_5, %c0_6] : memref<2x512xf32, #tpu.memory_space<vmem>>, vector<2x512xf32>
    tpu.vector_store %arg4[%c0_5, %c0_6], %11 {strides = array<i32>} : memref<2x512xf32, #tpu.memory_space<vmem>>, vector<2x512xf32>,
    %13 = vector.extract_strided_slice %2 {offsets = [0, 512], sizes = [2, 128], strides = [1, 1]} : vector<2x896xf32> to vector<2x128xf32>
    %14 = vector.extract_strided_slice %2 {offsets = [0, 640], sizes = [2, 128], strides = [1, 1]} : vector<2x896xf32> to vector<2x128xf32>
    %15 = vector.extract_strided_slice %2 {offsets = [0, 768], sizes = [2, 128], strides = [1, 1]} : vector<2x896xf32> to vector<2x128xf32>
    %16 = arith.maximumf %13, %14 : vector<2x128xf32>
    %17 = arith.maximumf %16, %15 : vector<2x128xf32>
    %18 = vector.extract_strided_slice %17 {offsets = [0, 0], sizes = [2, 5], strides = [1, 1]} : vector<2x128xf32> to vector<2x5xf32>
    %19 = vector.broadcast %9 : vector<2x1xf32> to vector<2x5xf32>
    %20 = arith.mulf %18, %19 : vector<2x5xf32>
    %c0_7 = arith.constant 0 : index
    %c0_8 = arith.constant 0 : index
    %21 = vector.load %arg3[%c0_7, %c0_8] : memref<2x5xf32, #tpu.memory_space<vmem>>, vector<2x5xf32>
    tpu.vector_store %arg3[%c0_7, %c0_8], %20 {strides = array<i32>} : memref<2x5xf32, #tpu.memory_space<vmem>>, vector<2x5xf32>,
    return
  }
  func.func @transform_0(%arg0: i32) -> (i32, i32) {
    %c0_i32 = arith.constant 0 : i32
    %c0_i32_0 = arith.constant 0 : i32
    return %arg0, %c0_i32 : i32, i32
  }
  func.func @transform_1(%arg0: i32) -> (i32, i32) {
    %c0_i32 = arith.constant 0 : i32
    %c0_i32_0 = arith.constant 0 : i32
    %c0_i32_1 = arith.constant 0 : i32
    return %c0_i32, %c0_i32_0 : i32, i32
  }
  func.func @transform_2(%arg0: i32) -> (i32, i32) {
    %c0_i32 = arith.constant 0 : i32
    %c0_i32_0 = arith.constant 0 : i32
    return %arg0, %c0_i32 : i32, i32
  }
  func.func @transform_3(%arg0: i32) -> (i32, i32) {
    %c0_i32 = arith.constant 0 : i32
    %c0_i32_0 = arith.constant 0 : i32
    return %arg0, %c0_i32 : i32, i32
  }
}

</mosaic_0001>

<bundles_post_ra>
// kernel: tpu_custom_call.1
= control target key start
LH: loop header
LB: loop body
LE: loop exit
PB: predicated region body
PF: predicated region fallthrough
CT: control target
= control target key end

     0   :  { %9 = vsyncpa [#allocation3], 0  ;;  %s469_s0 = inlined_call_operand.hbm [shape: f32[2,32], index: 0, kind: input, shape index: {}]   ;;  %s470_s1 = inlined_call_operand.hbm [shape: f32[32,896], index: 1, kind: input, shape index: {}]   ;;  %s471_s2 = inlined_call_operand.hbm [shape: f32[2,5], index: 2, kind: output, shape index: {0}]   ;;  %s472_s3 = inlined_call_operand.hbm [shape: f32[2,512], index: 3, kind: output, shape index: {1}]  }
   0x1   :  { %10 = vsyncpa [#allocation6], 0 }
   0x2   :  { %11 = vsyncpa [#allocation4], 0 }
   0x3   :  { %12 = vsyncpa [#allocation9], 0  ;;  %s18_s14 = sshll.u32 %s469_s0, 4  ;;  %s419_s15 = smov [#allocation2]   ;;  %s19_s14 = int_to_ptr.hbm [resolvable:$true] %s18_s14 }
   0x4   :  { %s20_s16 = sshll.u32 %s419_s15, 4  ;;  %s28_s19 = sshll.u32 %s470_s1, 4  ;;  %s21_s16 = int_to_ptr.vmem [resolvable:$true] %s20_s16  ;;  %s29_s19 = int_to_ptr.hbm [resolvable:$true] %s28_s19 }
   0x5   :  { %23 = dma.hbm_to_vmem [thread:$0]  %s19_s14, 32, %s21_s16, [#allocation3]  }
   0x6   :  { %s420_s20 = smov [#allocation5]   ;;  %s421_s22 = smov 896  }
   0x7   :  { %s30_s21 = sshll.u32 %s420_s20, 4  ;;  %s422_s23 = smov 56   ;;  %s31_s21 = int_to_ptr.vmem [resolvable:$true] %s30_s21 }
   0x8   :  { %36 = dma.hbm_to_vmem [thread:$0]  %s29_s19, 3584, %s31_s21, [#allocation6], %s421_s22, %s421_s22, %s422_s23  }
   0x9   :  { %411 = dma.done.wait [#allocation3], 32  }
   0xa   :  { %412 = vsyncadd [#allocation3], 4294967264 }
   0xb   :  { %413 = dma.done.wait [#allocation6], 3584  }
   0xc   :  { %414 = vsyncadd [#allocation6], 4294963712  ;;  %v69_v0 = vld [vmem:[#allocation5 + $0xb8] sm:$0xff]  ;;  %v62_v1 = vld [vmem:[#allocation5 + $0x80] sm:$0xff]  ;;  %vm74_vm0 = vcmask 261120   ;;  %vm222_vm1 = vcmask 1041408  }
   0xd   :  { %v70_v2 = vld [vmem:[#allocation5 + $0xc0] sm:$0xff]  ;;  %130 = vmatpush.msra.mxu2 %v69_v0  ;;  %v67_v3 = vld [vmem:[#allocation5 + $0xa8] sm:$0xff]  ;;  %v68_v4 = vld [vmem:[#allocation5 + $0xb0] sm:$0xff]  ;;  %s423_s0 = smov [#allocation7]   ;;  %s273_s26 = sshll.u32 %s471_s2, 4  ;;  %vm264_vm5 = vcmask 33792   ;;  %s274_s26 = int_to_ptr.hbm [resolvable:$true] %s273_s26 }
   0xe   :  { %150 = vmatpush.msra.mxu3 %v70_v2  ;;  %v55_v5 = vld [vmem:[#allocation5 + $0x48] sm:$0xff]  ;;  %90 = vmatpush.msra.mxu0 %v67_v3  ;;  %v60_v7 = vld [vmem:[#allocation5 + $0x70] sm:$0xff]  ;;  %v61_v8 = vld [vmem:[#allocation5 + $0x78] sm:$0xff]  ;;  %s271_s1 = sshll.u32 %s423_s0, 4  ;;  %s424_s27 = smov [#allocation8]   ;;  %vm255_vm6 = vcmask 1045508   ;;  %s272_s1 = int_to_ptr.vmem [resolvable:$true] %s271_s1 }
   0xf   :  { %110 = vmatpush.msra.mxu1 %v68_v4  ;;  %v63_v6 = vld [vmem:[#allocation5 + $0x88] sm:$0xff]  ;;  %131 = vmatpush.msra.mxu2 %v62_v1  ;;  %v48_v9 = vld [vmem:[#allocation5 + $0x10] sm:$0xff]  ;;  %v53_v11 = vld [vmem:[#allocation5 + $0x38] sm:$0xff]  ;;  %s282_s28 = sshll.u32 %s424_s27, 4  ;;  %s284_s2 = sshll.u32 %s472_s3, 4  ;;  %vm257_vm7 = vcmask 1043456   ;;  %s283_s28 = int_to_ptr.vmem [resolvable:$true] %s282_s28  ;;  %s285_s2 = int_to_ptr.hbm [resolvable:$true] %s284_s2 }
  0x10   :  { %151 = vmatpush.msra.mxu3 %v63_v6  ;;  %v56_v10 = vld [vmem:[#allocation5 + $0x50] sm:$0xff]  ;;  %91 = vmatpush.msra.mxu0 %v60_v7  ;;  %v54_v12 = vld [vmem:[#allocation5 + $0x40] sm:$0xff]  ;;  %v49_v13 = vld [vmem:[#allocation5 + $0x18] sm:$0xff] }
  0x11   :  { %111 = vmatpush.msra.mxu1 %v61_v8  ;;  %132 = vmatpush.msra.mxu2 %v55_v5  ;;  %v45_v14 = vld [vmem:[#allocation2] sm:$0x3]  ;;  %v46_v15 = vld [vmem:[#allocation5] sm:$0xff]  ;;  %v47_v16 = vld [vmem:[#allocation5 + $0x8] sm:$0xff] }
  0x12   :  { %152 = vmatpush.msra.mxu3 %v56_v10  ;;  %92 = vmatpush.msra.mxu0 %v53_v11  ;;  %v73_v17 = vld [vmem:[#allocation5 + $0xd8] sm:$0xff]  ;;  %v66_v18 = vld [vmem:[#allocation5 + $0xa0] sm:$0xff]  ;;  %v71_v19 = vld [vmem:[#allocation5 + $0xc8] sm:$0xff] }
  0x13   :  { %112 = vmatpush.msra.mxu1 %v54_v12  ;;  %133 = vmatpush.msra.mxu2 %v48_v9  ;;  %v72_v20 = vld [vmem:[#allocation5 + $0xd0] sm:$0xff]  ;;  %v59_v21 = vld [vmem:[#allocation5 + $0x68] sm:$0xff]  ;;  %v65_v23 = vld [vmem:[#allocation5 + $0x98] sm:$0xff] }
  0x14   :  { %153 = vmatpush.msra.mxu3 %v49_v13  ;;  %302 = vmatmul.msk.f32.vlgmr.msra.gmra.mxu2 %vm74_vm0, %v45_v14  ;;  %v64_v22 = vld [vmem:[#allocation5 + $0x90] sm:$0xff]  ;;  %v57_v25 = vld [vmem:[#allocation5 + $0x58] sm:$0xff]  ;;  %v58_v26 = vld [vmem:[#allocation5 + $0x60] sm:$0xff] }
  0x15   :  { %303 = vmatmul.msk.f32.vlgmr.msra.gmra.mxu3 %vm74_vm0, %v45_v14  ;;  %93 = vmatpush.msra.mxu0 %v46_v15  ;;  %v52_v24 = vld [vmem:[#allocation5 + $0x30] sm:$0xff]  ;;  %v50_v27 = vld [vmem:[#allocation5 + $0x20] sm:$0xff]  ;;  %v51_v28 = vld [vmem:[#allocation5 + $0x28] sm:$0xff] }
  0x16   :  { %113 = vmatpush.msra.mxu1 %v47_v16  ;;  %300 = vmatmul.msk.f32.vlgmr.msra.gmra.mxu0 %vm74_vm0, %v45_v14 }
  0x17   :  { %301 = vmatmul.msk.f32.vlgmr.msra.gmra.mxu1 %vm74_vm0, %v45_v14  ;;  %210 = vmatpush.msrb.mxu2 %v73_v17 }
  0x18   :  { %170 = vmatpush.msrb.mxu0 %v71_v19  ;;  %190 = vmatpush.msrb.mxu1 %v72_v20 }
  0x19   :  { %211 = vmatpush.msrb.mxu2 %v66_v18 }
  0x1a   :  { %171 = vmatpush.msrb.mxu0 %v64_v22  ;;  %191 = vmatpush.msrb.mxu1 %v65_v23 }
  0x1b   :  { %212 = vmatpush.msrb.mxu2 %v59_v21 }
  0x1c   :  { %172 = vmatpush.msrb.mxu0 %v57_v25  ;;  %192 = vmatpush.msrb.mxu1 %v58_v26 }
  0x1d   :  { %213 = vmatpush.msrb.mxu2 %v52_v24 }
  0x1e   :  { %306 = vmatmul.msk.f32.vlgmr.msrb.gmra.mxu2 %vm74_vm0, %v45_v14  ;;  %173 = vmatpush.msrb.mxu0 %v50_v27 }
  0x1f   :  { %193 = vmatpush.msrb.mxu1 %v51_v28  ;;  %304 = vmatmul.msk.f32.vlgmr.msrb.gmra.mxu0 %vm74_vm0, %v45_v14 }
  0x20   :  { %305 = vmatmul.msk.f32.vlgmr.msrb.gmra.mxu1 %vm74_vm0, %v45_v14 }
  0x93   :  { %v95_v29 = vpop.f32.mrf.mxu0 }
  0x94   :  { %v115_v30 = vpop.f32.mrf.mxu1  ;;  %v218_v31 = vmul.f32 %v95_v29, %v95_v29 }
  0x95   :  { %v219_v32 = vmul.f32 %v115_v30, %v115_v30 }
  0x96   :  { %v223_v33 = vsel %vm222_vm1, %v218_v31, 0.0 }
  0x97   :  { %v224_v34 = vsel %vm222_vm1, %v219_v32, 0.0  ;;  %v135_v35 = vpop.f32.mrf.mxu2 }
  0x98   :  { %v155_v36 = vpop.f32.mrf.mxu3  ;;  %v225_v37 = vadd.f32 %v224_v34, %v223_v33  ;;  %v220_v38 = vmul.f32 %v135_v35, %v135_v35 }
  0x99   :  { %v221_v39 = vmul.f32 %v155_v36, %v155_v36 }
  0x9a   :  { %v226_v40 = vsel %vm222_vm1, %v220_v38, 0.0 }
  0x9b   :  { %v228_v41 = vsel %vm222_vm1, %v221_v39, 0.0  ;;  %v227_v42 = vadd.f32 %v226_v40, %v225_v37 }
  0x9c   :  { %v175_v48 = vpop.f32.mrf.mxu0 }
  0x9d   :  { %v229_v43 = vadd.f32 %v228_v41, %v227_v42  ;;  %v195_v49 = vpop.f32.mrf.mxu1 }
  0x9e   :  { %v261_v51 = vmax.f32 %v175_v48, %v195_v49 }
  0x9f   :  { %230 = vadd.xlane.f32.xlu0 %v229_v43 }
  0xa1   :  { %v215_v53 = vpop.f32.mrf.mxu2 }
  0xa2   :  { %v262_v55 = vmax.f32 %v261_v51, %v215_v53 }
 0x112   :  { %v231_v44 = vpop.xlane.xlu0 %230 }
 0x113   :  { %v232_v45 = vmax.f32 %v231_v44, 1e-24 }
 0x115   :  { %313 = vrsqrt.f32 %v232_v45  ;;  %vm239_vm3 = vweird.f32 %v232_v45 }
 0x11b   :  { %v314_v46 = vpop.eup %313 }
 0x11c   :  { %v234_v47 = vmul.f32 %v314_v46, %v232_v45  ;;  %vm240_vm2 = vweird.f32 %v314_v46 }
 0x11d   :  { %vm241_vm4 = vmor %vm239_vm3, %vm240_vm2 }
 0x11e   :  { %v235_v50 = vmul.f32 %v314_v46, %v234_v47 }
 0x120   :  { %v236_v52 = vmul.f32 0.5, %v235_v50 }
 0x122   :  { %v237_v54 = vsub.f32 1.5, %v236_v52 }
 0x124   :  { %v238_v56 = vmul.f32 %v314_v46, %v237_v54 }
 0x126   :  { %v242_v57 = vsel %vm241_vm4, %v314_v46, %v238_v56 }
 0x127   :  { %v263_v58 = vmul.f32 %v262_v55, %v242_v57  ;;  %v244_v59 = vmul.f32 %v242_v57, %v115_v30  ;;  %v245_v60 = vmul.f32 %v242_v57, %v135_v35  ;;  %v246_v61 = vmul.f32 %v242_v57, %v155_v36 }
 0x128   :  { %v243_v62 = vmul.f32 %v242_v57, %v95_v29 }
 0x129   :  { %265 = vst.msk [vmem:[#allocation7] sm:$0x3] %vm264_vm5, %v263_v58  ;;  %v251_v63 = vrot.slane %v244_v59, 6  ;;  %v252_v0 = vrot.slane %v245_v60, 4  ;;  %v253_v1 = vrot.slane %v246_v61, 2 }
 0x12a   :  { %276 = dma.vmem_to_hbm [thread:$0]  %s272_s1, 32, %s274_s26, [#allocation4]  }
 0x12b   :  { %v254_v2 = vsel %vm222_vm1, %v243_v62, %v251_v63  ;;  %v256_v3 = vsel %vm255_vm6, %v252_v0, %v253_v1 }
 0x12c   :  { %v258_v4 = vsel %vm257_vm7, %v254_v2, %v256_v3 }
 0x12d   :  { %260 = vst [vmem:[#allocation8] sm:$0xff] %v258_v4 }
 0x12e   :  { %287 = dma.vmem_to_hbm [thread:$0]  %s283_s28, 128, %s285_s2, [#allocation9]  }
 0x12f   :  { %415 = dma.done.wait [#allocation4], 32  }
 0x130   :  { %416 = vsyncadd [#allocation4], 4294967264 }
 0x131   :  { %417 = dma.done.wait [#allocation9], 128  }
 0x132   :  { %418 = vsyncadd [#allocation9], 4294967168 }
 0x133   :  { %296 = vsyncpa [#allocation3], 1 }
 0x134   :  { %297 = vsyncpa [#allocation6], 1 }
 0x135   :  { %298 = vsyncpa [#allocation4], 1 }
 0x136   :  { %299 = vsyncpa [#allocation9], 1 }

</bundles_post_ra>
